<compile_context>
chip_gen: v7x
topology: tpu7x:2x2x1
jax: 0.10.0
libtpu: 0.0.40
codegen_flags: <defaults>
</compile_context>

<pallas_src>
import functools

import jax
import jax.numpy as jnp
from jax import lax
from jax.experimental import pallas as pl
from jax.experimental.pallas import tpu as pltpu

EPS = 1e-6  # bert_pytorch LayerNorm default


def _sublayer_connection_kernel(
    # scalar-prefetch refs
    seed_ref,
    # inputs
    x_ref, gamma_ref, beta_ref, w_ref, wb_ref,
    # outputs
    o_ref,
    *, p_drop: float,
):
    x = x_ref[...].astype(jnp.float32)              # (TM, H)
    tm, h = x.shape

    # ---- LayerNorm (norm-first), torch semantics: unbiased std, eps on std --
    # Fused single pass: issue sum(x) and sum(x*x) together (halves XLU work).
    s1 = jnp.sum(x, axis=-1, keepdims=True)
    s2 = jnp.sum(x * x, axis=-1, keepdims=True)
    mean = s1 * (1.0 / h)
    var = (s2 - s1 * mean) * (1.0 / (h - 1))        # unbiased (N-1) == torch.std
    inv = 1.0 / (jnp.sqrt(var) + EPS)               # one reciprocal per row
    y = gamma_ref[...] * ((x - mean) * inv) + beta_ref[...]

    # ---- sublayer: Linear(H, H), element [0] of its (out, aux) tuple --------
    # bf16 MXU operands (W is shipped as bf16), f32 accumulation.
    z = jnp.dot(y.astype(w_ref.dtype), w_ref[...],
                preferred_element_type=jnp.float32) + wb_ref[...]

    # ---- inverted dropout (train-mode semantics) -----------------------------
    # Counter-based hash of the global element index -> 23 uniform bits.
    # Portable (plain VPU int ops; no TPU-only PRNG primitives) and invariant
    # to grid order / megacore sharding.
    if p_drop > 0.0:
        row0 = pl.program_id(0) * tm
        rows = (lax.broadcasted_iota(jnp.int32, z.shape, 0) + row0).astype(jnp.uint32)
        cols = lax.broadcasted_iota(jnp.int32, z.shape, 1).astype(jnp.uint32)
        idx = rows * jnp.uint32(h) + cols
        seed_u = seed_ref[0].astype(jnp.uint32)
        hb = idx ^ (seed_u * jnp.uint32(0x9E3779B9))
        hb = (hb ^ (hb >> 16)) * jnp.uint32(0x85EBCA6B)   # murmur3 finalizer
        hb = (hb ^ (hb >> 13)) * jnp.uint32(0xC2B2AE35)
        hb = hb ^ (hb >> 16)
        u23 = hb >> 9                                      # 23 uniform bits
        thresh = jnp.uint32(int(round(p_drop * (1 << 23))))
        keep = u23 >= thresh
        z = jnp.where(keep, z * (1.0 / (1.0 - p_drop)), 0.0)

    # ---- residual ------------------------------------------------------------
    o_ref[...] = (x + z).astype(o_ref.dtype)


def _pick_row_tile(m, requested):
    """Largest multiple of 8 that divides m and is <= requested."""
    t = max(8, min(requested, m))
    t -= t % 8
    while t > 8 and m % t != 0:
        t -= 8
    return t


def sublayer_connection(x, gamma, beta, w, wb, *, dropout_p, seed, tm=256):
    """x: (B, S, H). Returns x + dropout(linear(layernorm(x)))."""
    B, S, H = x.shape
    M = B * S
    assert M % 8 == 0 and H % 128 == 0, "pick shapes aligned to (8,128) tiles"
    tm = _pick_row_tile(M, tm)
    assert M % tm == 0

    x2 = x.reshape(M, H)
    seed_arr = jnp.array([seed], dtype=jnp.int32)
    # Ship the sublayer weight as bf16: MXU-native operand on v6e/v7x and half
    # the VMEM/HBM footprint; accumulation stays f32 inside the kernel.
    w_bf16 = w.astype(jnp.bfloat16)
    # TODO(synk): for large H (>= ~2048), K-tile W with a (tm, tn) accumulator
    # so the weight need not sit fully resident in v7x's 64 MiB VMEM.

    kernel = functools.partial(_sublayer_connection_kernel, p_drop=float(dropout_p))

    out2 = pl.pallas_call(
        kernel,
        out_shape=jax.ShapeDtypeStruct((M, H), x.dtype),
        grid_spec=pltpu.PrefetchScalarGridSpec(
            num_scalar_prefetch=1,
            grid=(M // tm,),
            in_specs=[
                pl.BlockSpec((tm, H), lambda i, _s: (i, 0)),   # x rows
                pl.BlockSpec((1, H), lambda i, _s: (0, 0)),    # gamma (a_2)
                pl.BlockSpec((1, H), lambda i, _s: (0, 0)),    # beta  (b_2)
                pl.BlockSpec((H, H), lambda i, _s: (0, 0)),    # sublayer W (bf16)
                pl.BlockSpec((1, H), lambda i, _s: (0, 0)),    # sublayer bias
            ],
            out_specs=pl.BlockSpec((tm, H), lambda i, _s: (i, 0)),
        ),
        compiler_params=pltpu.CompilerParams(
            # Dropout mask hashes the global element index, so grid steps are
            # order-independent -> shardable across v7x's two TensorCores.
            dimension_semantics=("parallel",),
            # Large row tiles + resident W: raise scoped VMEM, with headroom
            # under v7x's 64 MiB physical VMEM.
            vmem_limit_bytes=48 * 1024 * 1024,
        ),
    )(seed_arr, x2, gamma, beta, w_bf16, wb)

    return out2.reshape(B, S, H)


def _reference_no_dropout(x, gamma, beta, w, wb):
    """Pure-JAX reference for the p=0 path (dropout is identity)."""
    mean = jnp.mean(x, axis=-1, keepdims=True)
    xc = x - mean
    h = x.shape[-1]
    var = jnp.sum(xc * xc, axis=-1, keepdims=True) / (h - 1)
    std = jnp.sqrt(var)
    y = gamma[0] * xc / (std + EPS) + beta[0]
    # Same bf16-operand / f32-accumulate matmul as the kernel.
    z = jnp.einsum("bsh,hk->bsk", y.astype(jnp.bfloat16), w.astype(jnp.bfloat16),
                   preferred_element_type=jnp.float32) + wb[0]
    return x + z


if __name__ == "__main__":
    key = jax.random.PRNGKey(0)
    k_x, k_w, k_b = jax.random.split(key, 3)

    B, S, H = 2, 8, 128
    dropout_p = 0.1

    x = jax.random.normal(k_x, (B, S, H), dtype=jnp.float32)

    # LayerNorm params: deterministic init (ones / zeros, as in the module)
    gamma = jnp.ones((1, H), dtype=jnp.float32)   # a_2
    beta = jnp.zeros((1, H), dtype=jnp.float32)   # b_2

    # Deterministic "sublayer" = Linear(H, H) returning (out, aux); we use out.
    w = jax.random.normal(k_w, (H, H), dtype=jnp.float32) * (1.0 / jnp.sqrt(H))
    wb = jax.random.normal(k_b, (1, H), dtype=jnp.float32) * 0.01

    # Run with dropout active (train-mode semantics).
    out = sublayer_connection(x, gamma, beta, w, wb, dropout_p=dropout_p, seed=42)
    out = jax.block_until_ready(out)
    assert out.shape == (B, S, H) and out.dtype == x.dtype

    # Correctness check on the deterministic (p = 0) path.
    out_p0 = sublayer_connection(x, gamma, beta, w, wb, dropout_p=0.0, seed=0)
    out_p0 = jax.block_until_ready(out_p0)
    ref = _reference_no_dropout(x, gamma, beta, w, wb)
    assert jnp.allclose(out_p0, ref, atol=2e-3, rtol=2e-3), "mismatch vs reference"

    print("KERNEL_OK")
</pallas_src>

<mosaic_0001>
module attributes {stable_mosaic.version = 11 : i64} {
  func.func @_sublayer_connection_kernel(%arg0: i32, %arg1: memref<1xi32, #tpu.memory_space<smem>>, %arg2: memref<16x128xf32, #tpu.memory_space<vmem>>, %arg3: memref<1x128xf32, #tpu.memory_space<vmem>>, %arg4: memref<1x128xf32, #tpu.memory_space<vmem>>, %arg5: memref<128x128xbf16, #tpu.memory_space<vmem>>, %arg6: memref<1x128xf32, #tpu.memory_space<vmem>>, %arg7: memref<16x128xf32, #tpu.memory_space<vmem>>) attributes {dimension_semantics = [#tpu.dimension_semantics<parallel>], iteration_bounds = array<i64: 1>, scalar_prefetch = 1 : i64, scratch_operands = 0 : i64, tpu.core_type = #tpu.core_type<tc>, window_params = [{transform_indices = @transform_0, window_bounds = array<i64: 16, 128>}, {pipeline_mode = #tpu.pipeline_mode<synchronous>, transform_indices = @transform_1, window_bounds = array<i64: 1, 128>}, {pipeline_mode = #tpu.pipeline_mode<synchronous>, transform_indices = @transform_2, window_bounds = array<i64: 1, 128>}, {pipeline_mode = #tpu.pipeline_mode<synchronous>, transform_indices = @transform_3, window_bounds = array<i64: 128, 128>}, {pipeline_mode = #tpu.pipeline_mode<synchronous>, transform_indices = @transform_4, window_bounds = array<i64: 1, 128>}, {transform_indices = @transform_5, window_bounds = array<i64: 16, 128>}]} {
    %c0 = arith.constant 0 : index
    %c0_0 = arith.constant 0 : index
    %0 = vector.load %arg2[%c0, %c0_0] : memref<16x128xf32, #tpu.memory_space<vmem>>, vector<16x128xf32>
    %cst = arith.constant dense<0.000000e+00> : vector<16xf32>
    %1 = vector.multi_reduction <add>, %0, %cst [1] : vector<16x128xf32> to vector<16xf32>
    %2 = vector.shape_cast %1 : vector<16xf32> to vector<16x1xf32>
    %3 = arith.mulf %0, %0 : vector<16x128xf32>
    %cst_1 = arith.constant dense<0.000000e+00> : vector<16xf32>
    %4 = vector.multi_reduction <add>, %3, %cst_1 [1] : vector<16x128xf32> to vector<16xf32>
    %5 = vector.shape_cast %4 : vector<16xf32> to vector<16x1xf32>
    %cst_2 = arith.constant 7.812500e-03 : f32
    %6 = vector.broadcast %cst_2 : f32 to vector<16x1xf32>
    %7 = arith.mulf %2, %6 : vector<16x1xf32>
    %8 = arith.mulf %2, %7 : vector<16x1xf32>
    %9 = arith.subf %5, %8 : vector<16x1xf32>
    %cst_3 = arith.constant 0.00787401571 : f32
    %10 = vector.broadcast %cst_3 : f32 to vector<16x1xf32>
    %11 = arith.mulf %9, %10 : vector<16x1xf32>
    %12 = math.sqrt %11 : vector<16x1xf32>
    %cst_4 = arith.constant 9.99999997E-7 : f32
    %13 = vector.broadcast %cst_4 : f32 to vector<16x1xf32>
    %14 = arith.addf %12, %13 : vector<16x1xf32>
    %cst_5 = arith.constant 1.000000e+00 : f32
    %15 = vector.broadcast %cst_5 : f32 to vector<16x1xf32>
    %16 = arith.divf %15, %14 : vector<16x1xf32>
    %c0_6 = arith.constant 0 : index
    %c0_7 = arith.constant 0 : index
    %17 = vector.load %arg3[%c0_6, %c0_7] : memref<1x128xf32, #tpu.memory_space<vmem>>, vector<1x128xf32>
    %18 = vector.broadcast %7 : vector<16x1xf32> to vector<16x128xf32>
    %19 = arith.subf %0, %18 : vector<16x128xf32>
    %20 = vector.broadcast %16 : vector<16x1xf32> to vector<16x128xf32>
    %21 = arith.mulf %19, %20 : vector<16x128xf32>
    %22 = vector.broadcast %17 : vector<1x128xf32> to vector<16x128xf32>
    %23 = arith.mulf %22, %21 : vector<16x128xf32>
    %c0_8 = arith.constant 0 : index
    %c0_9 = arith.constant 0 : index
    %24 = vector.load %arg4[%c0_8, %c0_9] : memref<1x128xf32, #tpu.memory_space<vmem>>, vector<1x128xf32>
    %25 = vector.broadcast %24 : vector<1x128xf32> to vector<16x128xf32>
    %26 = arith.addf %23, %25 : vector<16x128xf32>
    %27 = arith.truncf %26 : vector<16x128xf32> to vector<16x128xbf16>
    %c0_10 = arith.constant 0 : index
    %c0_11 = arith.constant 0 : index
    %28 = vector.load %arg5[%c0_10, %c0_11] : memref<128x128xbf16, #tpu.memory_space<vmem>>, vector<128x128xbf16>
    %cst_12 = arith.constant dense<0.000000e+00> : vector<16x128xf32>
    %29 = tpu.matmul %27, %28, %cst_12 {dimension_numbers = #tpu.dot_dimension_numbers<[1], [0], [0], [1], [0, 0, 1, 1], [], []>} : vector<16x128xbf16>, vector<128x128xbf16>, vector<16x128xf32> -> vector<16x128xf32>
    %c0_13 = arith.constant 0 : index
    %c0_14 = arith.constant 0 : index
    %30 = vector.load %arg6[%c0_13, %c0_14] : memref<1x128xf32, #tpu.memory_space<vmem>>, vector<1x128xf32>
    %31 = vector.broadcast %30 : vector<1x128xf32> to vector<16x128xf32>
    %32 = arith.addf %29, %31 : vector<16x128xf32>
    %c16_i32 = arith.constant 16 : i32
    %33 = arith.muli %arg0, %c16_i32 : i32
    %34 = tpu.iota {dimensions = array<i32: 0>} : vector<16x128xi32>
    %35 = vector.broadcast %33 : i32 to vector<16x128xi32>
    %36 = arith.addi %34, %35 : vector<16x128xi32>
    %37 = tpu.iota {dimensions = array<i32: 1>} : vector<16x128xi32>
    %c128_i32 = arith.constant 128 : i32
    %38 = vector.broadcast %c128_i32 : i32 to vector<16x128xi32>
    %39 = arith.muli %36, %38 : vector<16x128xi32>
    %40 = arith.addi %39, %37 : vector<16x128xi32>
    %c0_15 = arith.constant 0 : index
    %41 = memref.load %arg1[%c0_15] : memref<1xi32, #tpu.memory_space<smem>>
    %c-1640531527_i32 = arith.constant -1640531527 : i32
    %42 = arith.muli %41, %c-1640531527_i32 : i32
    %43 = vector.broadcast %42 : i32 to vector<16x128xi32>
    %44 = arith.xori %40, %43 : vector<16x128xi32>
    %c16_i32_16 = arith.constant 16 : i32
    %45 = vector.broadcast %c16_i32_16 : i32 to vector<16x128xi32>
    %46 = arith.shrui %44, %45 : vector<16x128xi32>
    %47 = arith.xori %44, %46 : vector<16x128xi32>
    %c-2048144789_i32 = arith.constant -2048144789 : i32
    %48 = vector.broadcast %c-2048144789_i32 : i32 to vector<16x128xi32>
    %49 = arith.muli %47, %48 : vector<16x128xi32>
    %c13_i32 = arith.constant 13 : i32
    %50 = vector.broadcast %c13_i32 : i32 to vector<16x128xi32>
    %51 = arith.shrui %49, %50 : vector<16x128xi32>
    %52 = arith.xori %49, %51 : vector<16x128xi32>
    %c-1028477387_i32 = arith.constant -1028477387 : i32
    %53 = vector.broadcast %c-1028477387_i32 : i32 to vector<16x128xi32>
    %54 = arith.muli %52, %53 : vector<16x128xi32>
    %c16_i32_17 = arith.constant 16 : i32
    %55 = vector.broadcast %c16_i32_17 : i32 to vector<16x128xi32>
    %56 = arith.shrui %54, %55 : vector<16x128xi32>
    %57 = arith.xori %54, %56 : vector<16x128xi32>
    %c9_i32 = arith.constant 9 : i32
    %58 = vector.broadcast %c9_i32 : i32 to vector<16x128xi32>
    %59 = arith.shrui %57, %58 : vector<16x128xi32>
    %c838861_i32 = arith.constant 838861 : i32
    %60 = vector.broadcast %c838861_i32 : i32 to vector<16x128xi32>
    %61 = arith.cmpi uge, %59, %60 : vector<16x128xi32>
    %cst_18 = arith.constant 1.11111116 : f32
    %62 = vector.broadcast %cst_18 : f32 to vector<16x128xf32>
    %63 = arith.mulf %32, %62 : vector<16x128xf32>
    %cst_19 = arith.constant 0.000000e+00 : f32
    %64 = vector.broadcast %cst_19 : f32 to vector<16x128xf32>
    %65 = arith.select %61, %63, %64 : vector<16x128xi1>, vector<16x128xf32>
    %66 = arith.addf %0, %65 : vector<16x128xf32>
    %c0_20 = arith.constant 0 : index
    %c0_21 = arith.constant 0 : index
    %67 = vector.load %arg7[%c0_20, %c0_21] : memref<16x128xf32, #tpu.memory_space<vmem>>, vector<16x128xf32>
    tpu.vector_store %arg7[%c0_20, %c0_21], %66 {strides = array<i32>} : memref<16x128xf32, #tpu.memory_space<vmem>>, vector<16x128xf32>,
    return
  }
  func.func @transform_0(%arg0: i32, %arg1: memref<1xi32, #tpu.memory_space<smem>>) -> (i32, i32) {
    %c0_i32 = arith.constant 0 : i32
    %c0_i32_0 = arith.constant 0 : i32
    return %arg0, %c0_i32 : i32, i32
  }
  func.func @transform_1(%arg0: i32, %arg1: memref<1xi32, #tpu.memory_space<smem>>) -> (i32, i32) {
    %c0_i32 = arith.constant 0 : i32
    %c0_i32_0 = arith.constant 0 : i32
    %c0_i32_1 = arith.constant 0 : i32
    return %c0_i32, %c0_i32_0 : i32, i32
  }
  func.func @transform_2(%arg0: i32, %arg1: memref<1xi32, #tpu.memory_space<smem>>) -> (i32, i32) {
    %c0_i32 = arith.constant 0 : i32
    %c0_i32_0 = arith.constant 0 : i32
    %c0_i32_1 = arith.constant 0 : i32
    return %c0_i32, %c0_i32_0 : i32, i32
  }
  func.func @transform_3(%arg0: i32, %arg1: memref<1xi32, #tpu.memory_space<smem>>) -> (i32, i32) {
    %c0_i32 = arith.constant 0 : i32
    %c0_i32_0 = arith.constant 0 : i32
    %c0_i32_1 = arith.constant 0 : i32
    return %c0_i32, %c0_i32_0 : i32, i32
  }
  func.func @transform_4(%arg0: i32, %arg1: memref<1xi32, #tpu.memory_space<smem>>) -> (i32, i32) {
    %c0_i32 = arith.constant 0 : i32
    %c0_i32_0 = arith.constant 0 : i32
    %c0_i32_1 = arith.constant 0 : i32
    return %c0_i32, %c0_i32_0 : i32, i32
  }
  func.func @transform_5(%arg0: i32, %arg1: memref<1xi32, #tpu.memory_space<smem>>) -> (i32, i32) {
    %c0_i32 = arith.constant 0 : i32
    %c0_i32_0 = arith.constant 0 : i32
    return %arg0, %c0_i32 : i32, i32
  }
}

</mosaic_0001>

<bundles_post_ra>
// kernel: tpu_custom_call.1
= control target key start
LH: loop header
LB: loop body
LE: loop exit
PB: predicated region body
PF: predicated region fallthrough
CT: control target
= control target key end

     0   :  { %12 = vsyncpa [#allocation5], 0  ;;  %s540_s0 = inlined_call_operand.<no memory space> [shape: s32[1], index: 0, kind: input, shape index: {}]   ;;  %s541_s1 = inlined_call_operand.hbm [shape: f32[16,128], index: 1, kind: input, shape index: {}]   ;;  %s542_s2 = inlined_call_operand.vmem [shape: f32[1,128], index: 2, kind: input, shape index: {}]   ;;  %s543_s3 = inlined_call_operand.vmem [shape: f32[1,128], index: 3, kind: input, shape index: {}]   ;;  %s544_s4 = inlined_call_operand.hbm [shape: bf16[128,128], index: 4, kind: input, shape index: {}]   ;;  %s545_s5 = inlined_call_operand.vmem [shape: f32[1,128], index: 5, kind: input, shape index: {}]   ;;  %s546_s6 = inlined_call_operand.hbm [shape: f32[16,128], index: 6, kind: output, shape index: {}]  }
   0x1   :  { %13 = vsyncpa [#allocation8], 0 }
   0x2   :  { %14 = vsyncpa [#allocation6], 0  ;;  %s428_s21 = smov [#allocation4]   ;;  %s356_s25 = scalar_lea.hbm %s541_s1, 256 }
   0x3   :  { %s20_s22 = sshll.u32 %s428_s21, 4  ;;  %p357_p0 = scmp.ne.s32.totalorder %s541_s1, %s356_s25  ;;  %s21_s22 = int_to_ptr.vmem [resolvable:$true] %s20_s22 }
   0x4   :  { %p360_p1 = scmp.lt.u32.totalorder %s356_s25, %s541_s1 }
   0x6   :  { %p362_p2 = pnand %p360_p1, %p357_p0 }
   0x8   :  { %365 = shalt.err (!%p362_p2)
}
   0x9   :  { %s366_s30 = scalar_lea.vmem %s21_s22, 256  ;;  %p371_p4 = scmp.lt.s32.totalorder %s21_s22, %s21_s22 }
   0xa   :  { %p367_p3 = scmp.ne.s32.totalorder %s21_s22, %s366_s30  ;;  %p372_p5 = scmp.lt.s32.totalorder %s366_s30, %s366_s30 }
   0xc   :  { %p373_p6 = por %p372_p5, %p371_p4 }
   0xe   :  { %p374_p7 = pnand %p373_p6, %p367_p3 }
  0x10   :  { %377 = shalt.err (!%p374_p7)
}
  0x11   :  { %s429_s7 = smov 128   ;;  %s430_s8 = smov 8  }
  0x12   :  { %26 = dma.hbm_to_vmem [thread:$0]  %s541_s1, 256, %s21_s22, [#allocation5], %s429_s7, %s429_s7, %s430_s8  }
  0x13   :  { %s431_s11 = smov [#allocation7]   ;;  %s378_s15 = scalar_lea.hbm %s544_s4, 1024 }
  0x14   :  { %s36_s12 = sshll.u32 %s431_s11, 4  ;;  %p379_p8 = scmp.ne.s32.totalorder %s544_s4, %s378_s15  ;;  %s37_s12 = int_to_ptr.vmem [resolvable:$true] %s36_s12 }
  0x15   :  { %p382_p9 = scmp.lt.u32.totalorder %s378_s15, %s544_s4 }
  0x17   :  { %p384_p10 = pnand %p382_p9, %p379_p8 }
  0x19   :  { %387 = shalt.err (!%p384_p10)
}
  0x1a   :  { %s388_s20 = scalar_lea.vmem %s37_s12, 1024  ;;  %p393_p12 = scmp.lt.s32.totalorder %s37_s12, %s37_s12 }
  0x1b   :  { %p389_p11 = scmp.ne.s32.totalorder %s37_s12, %s388_s20  ;;  %p394_p13 = scmp.lt.s32.totalorder %s388_s20, %s388_s20 }
  0x1d   :  { %p395_p0 = por %p394_p13, %p393_p12 }
  0x1f   :  { %p396_p1 = pnand %p395_p0, %p389_p11 }
  0x21   :  { %399 = shalt.err (!%p396_p1)
}
  0x22   :  { %s432_s1 = smov 64   ;;  %s433_s21 = smov 4  }
  0x23   :  { %42 = dma.hbm_to_vmem [thread:$0]  %s544_s4, 1024, %s37_s12, [#allocation8], %s432_s1, %s432_s1, %s433_s21  }
  0x24   :  { %422 = dma.done.wait [#allocation5], 256  }
  0x25   :  { %423 = vsyncadd [#allocation5], 4294967040 }
  0x26   :  { %424 = dma.done.wait [#allocation8], 1024  }
  0x27   :  { %425 = vsyncadd [#allocation8], 4294966272  ;;  %v499_v0 = vld [vmem:[#allocation4] sm:$0xff]  ;;  %v501_v1 = vld [vmem:[#allocation4 + $0x8] sm:$0xff]  ;;  %v434_v5 = vmov 0.0   ;;  %vm435_vm0 = vmmov 0   ;;  %v228_v50 = vlaneseq }
  0x28   :  { %54 = vadd.xlane.f32.xlu0 %v499_v0  ;;  %v58_v2 = vmul.f32 %v499_v0, %v499_v0  ;;  %v59_v3 = vmul.f32 %v501_v1, %v501_v1  ;;  %v340_v4 = vld [vmem:[#allocation7] sm:$0xff]   ;;  %311 = vmatprep.subr.bf16.mxu0 %v434_v5  ;;  %v341_v6 = vld [vmem:[#allocation7 + $0x8] sm:$0xff]   ;;  %v342_v7 = vld [vmem:[#allocation7 + $0x10] sm:$0xff]   ;;  %s241_s28 = smul.u32 2654435769, %s540_s0  ;;  %s436_s29 = smov [#allocation9]  }
  0x29   :  { %312 = vmatpush3.bf16.msra.mxu0 %v340_v4  ;;  %v343_v8 = vld [vmem:[#allocation7 + $0x18] sm:$0xff]   ;;  %327 = vmatprep.mubr.msk.bf16.mxu0 %vm435_vm0, %v434_v5  ;;  %v344_v9 = vld [vmem:[#allocation7 + $0x20] sm:$0xff]   ;;  %v345_v10 = vld [vmem:[#allocation7 + $0x28] sm:$0xff]   ;;  %v229_v51 = vshrl.u32 %v228_v50, 7  ;;  %v235_v53 = vand.u32 127, %v228_v50  ;;  %s278_s30 = sshll.u32 %s436_s29, 4  ;;  %s279_s30 = int_to_ptr.vmem [resolvable:$true] %s278_s30 }
  0x2a   :  { %60 = vadd.xlane.f32.xlu1 %v58_v2  ;;  %313 = vmatprep.subr.bf16.mxu0 %v434_v5  ;;  %v346_v11 = vld [vmem:[#allocation7 + $0x30] sm:$0xff]   ;;  %v347_v12 = vld [vmem:[#allocation7 + $0x38] sm:$0xff]   ;;  %v242_v57 = vstv %s241_s28  ;;  %p405_p3 = scmp.lt.s32.totalorder %s279_s30, %s279_s30 }
  0x2b   :  { %v291_v40 = vld [vmem:[%s542_s2] ss:$0 sm:$0xff]  ;;  %v230_v52 = vadd.s32 8, %v229_v51  ;;  %v236_v54 = vmul.u32 128, %v229_v51 }
  0x2c   :  { %56 = vadd.xlane.f32.xlu0 %v501_v1  ;;  %v292_v45 = vld [vmem:[%s543_s3] ss:$0 sm:$0xff] }
  0x2d   :  { %314 = vmatpush3.bf16.msra.mxu0 %v341_v6  ;;  %v237_v55 = vmul.u32 128, %v230_v52  ;;  %v238_v56 = vadd.s32 %v236_v54, %v235_v53 }
  0x2e   :  { %62 = vadd.xlane.f32.xlu1 %v59_v3  ;;  %315 = vmatprep.subr.bf16.mxu0 %v434_v5 }
  0x2f   :  { %v239_v58 = vadd.s32 %v237_v55, %v235_v53  ;;  %v243_v59 = vxor.u32 %v242_v57, %v238_v56 }
  0x31   :  { %316 = vmatpush3.bf16.msra.mxu0 %v342_v7  ;;  %v244_v60 = vxor.u32 %v242_v57, %v239_v58  ;;  %v245_v61 = vshrl.u32 %v243_v59, 16 }
  0x32   :  { %317 = vmatprep.subr.bf16.mxu0 %v434_v5 }
  0x33   :  { %v246_v62 = vshrl.u32 %v244_v60, 16  ;;  %v247_v63 = vxor.u32 %v245_v61, %v243_v59 }
  0x35   :  { %318 = vmatpush3.bf16.msra.mxu0 %v343_v8  ;;  %v248_v2 = vxor.u32 %v246_v62, %v244_v60  ;;  %v249_v3 = vmul.u32 2246822507, %v247_v63 }
  0x36   :  { %319 = vmatprep.subr.bf16.mxu0 %v434_v5 }
  0x37   :  { %v250_v4 = vmul.u32 2246822507, %v248_v2 }
  0x39   :  { %320 = vmatpush3.bf16.msra.mxu0 %v344_v9  ;;  %v252_v6 = vshrl.u32 %v250_v4, 13 }
  0x3a   :  { %321 = vmatprep.subr.bf16.mxu0 %v434_v5 }
  0x3b   :  { %v254_v8 = vxor.u32 %v252_v6, %v250_v4 }
  0x3d   :  { %322 = vmatpush3.bf16.msra.mxu0 %v345_v10  ;;  %v256_v10 = vmul.u32 3266489909, %v254_v8 }
  0x3e   :  { %323 = vmatprep.subr.bf16.mxu0 %v434_v5 }
  0x41   :  { %324 = vmatpush3.bf16.msra.mxu0 %v346_v11 }
  0x42   :  { %325 = vmatprep.subr.bf16.mxu0 %v434_v5  ;;  %v251_v5 = vshrl.u32 %v249_v3, 13 }
  0x44   :  { %v253_v7 = vxor.u32 %v251_v5, %v249_v3 }
  0x45   :  { %326 = vmatpush3.bf16.msra.mxu0 %v347_v12  ;;  %v258_v12 = vshrl.u32 %v256_v10, 16 }
  0x46   :  { %v255_v9 = vmul.u32 3266489909, %v253_v7 }
  0x48   :  { %v257_v11 = vshrl.u32 %v255_v9, 16 }
  0xb5   :  { %v55_v13 = vpop.xlane.xlu0 %54 }
  0xb6   :  { %v64_v14 = vmul.f32 0.0078125, %v55_v13 }
  0xb7   :  { %v61_v15 = vpop.xlane.xlu1 %60 }
  0xb8   :  { %v66_v16 = vmul.f32 %v64_v14, %v55_v13  ;;  %v93_v38 = vsub.f32 %v499_v0, %v64_v14  ;;  %v259_v13 = vxor.u32 %v257_v11, %v255_v9  ;;  %v260_v14 = vxor.u32 %v258_v12, %v256_v10 }
  0xb9   :  { %v57_v17 = vpop.xlane.xlu0 %56 }
  0xba   :  { %v65_v18 = vmul.f32 0.0078125, %v57_v17  ;;  %v68_v19 = vsub.f32 %v61_v15, %v66_v16  ;;  %v293_v15 = vld [vmem:[%s545_s5] ss:$0 sm:$0xff]  ;;  %v261_v16 = vshrl.u32 %v259_v13, 9  ;;  %s400_s5 = scalar_lea.vmem %s279_s30, 256 }
  0xbb   :  { %v63_v22 = vpop.xlane.xlu1 %62  ;;  %p401_p2 = scmp.ne.s32.totalorder %s279_s30, %s400_s5  ;;  %p406_p4 = scmp.lt.s32.totalorder %s400_s5, %s400_s5 }
  0xbc   :  { %v67_v20 = vmul.f32 %v65_v18, %v57_v17  ;;  %v70_v21 = vmul.f32 0.007874016, %v68_v19  ;;  %v94_v41 = vsub.f32 %v501_v1, %v65_v18  ;;  %v262_v18 = vshrl.u32 %v260_v14, 9 }
  0xbd   :  { %vm263_vm5 = vcmp.ge.u32.totalorder %v261_v16, 838861  ;;  %p407_p5 = por %p406_p4, %p405_p3 }
  0xbe   :  { %348 = vrsqrt.f32 %v70_v21  ;;  %v69_v23 = vsub.f32 %v63_v22, %v67_v20  ;;  %vm74_vm1 = vcmp.eq.f32.partialorder %v70_v21, inf  ;;  %v77_v27 = vand.u32 2147483648, %v70_v21 }
  0xbf   :  { %vm76_vm2 = vcmp.eq.f32.partialorder %v70_v21, 0.0  ;;  %vm264_vm6 = vcmp.ge.u32.totalorder %v262_v18, 838861  ;;  %p408_p6 = pnand %p407_p5, %p401_p2 }
  0xc0   :  { %v71_v24 = vmul.f32 0.007874016, %v69_v23 }
  0xc2   :  { %350 = vrsqrt.f32 %v71_v24  ;;  %vm81_vm3 = vcmp.eq.f32.partialorder %v71_v24, inf  ;;  %v84_v33 = vand.u32 2147483648, %v71_v24  ;;  %vm83_vm4 = vcmp.eq.f32.partialorder %v71_v24, 0.0 }
  0xc8   :  { %v349_v25 = vpop.eup %348 }
  0xc9   :  { %v73_v26 = vmul.f32 %v349_v25, %v70_v21 }
  0xcb   :  { %v75_v28 = vsel %vm74_vm1, %v70_v21, %v73_v26 }
  0xcc   :  { %v78_v29 = vsel %vm76_vm2, %v77_v27, %v75_v28  ;;  %v351_v30 = vpop.eup %350 }
  0xcd   :  { %v86_v31 = vadd.f32 1e-06, %v78_v29  ;;  %v80_v32 = vmul.f32 %v351_v30, %v71_v24 }
  0xcf   :  { %352 = vrcp.f32 %v86_v31  ;;  %v82_v34 = vsel %vm81_vm3, %v71_v24, %v80_v32 }
  0xd0   :  { %v85_v35 = vsel %vm83_vm4, %v84_v33, %v82_v34 }
  0xd1   :  { %v87_v36 = vadd.f32 1e-06, %v85_v35 }
  0xd3   :  { %354 = vrcp.f32 %v87_v36 }
  0xd9   :  { %v353_v37 = vpop.eup %352 }
  0xda   :  { %v95_v39 = vmul.f32 %v353_v37, %v93_v38 }
  0xdc   :  { %v103_v44 = vmul.f32 %v291_v40, %v95_v39 }
  0xdd   :  { %v355_v42 = vpop.eup %354 }
  0xde   :  { %v96_v43 = vmul.f32 %v355_v42, %v94_v41  ;;  %v112_v47 = vadd.f32 %v292_v45, %v103_v44 }
  0xe0   :  { %v104_v46 = vmul.f32 %v291_v40, %v96_v43 }
  0xe2   :  { %v113_v48 = vadd.f32 %v292_v45, %v104_v46 }
  0xe4   :  { %v114_v49 = vpack.c.bf16 %v113_v48, %v112_v47 }
  0xe6   :  { %328 = vmatmul.mubr.bf16.vlgmr.msra.gmra.mrb[0].mxu0 %v114_v49 }
 0x1b9   :  { %v220_v17 = vpop.f32.mrb[0].mxu0 }
 0x1ba   :  { %v221_v19 = vadd.f32 %v293_v15, %v220_v17  ;;  %v329_v20 = vpop.f32.mrb[1].mxu0 }
 0x1bb   :  { %v223_v21 = vpop.f32.mrb[2].mxu0 }
 0x1bc   :  { %v265_v22 = vmul.f32 1.1111112, %v221_v19  ;;  %v224_v23 = vadd.f32 %v293_v15, %v223_v21  ;;  %v330_v24 = vpop.f32.mrb[3].mxu0 }
 0x1be   :  { %v267_v25 = vsel %vm263_vm5, %v265_v22, 0.0  ;;  %v266_v26 = vmul.f32 1.1111112, %v224_v23 }
 0x1bf   :  { %v269_v27 = vadd.f32 %v267_v25, %v499_v0 }
 0x1c0   :  { %v268_v28 = vsel %vm264_vm6, %v266_v26, 0.0 }
 0x1c1   :  { %271 = vst [vmem:[#allocation9] sm:$0xff] %v269_v27  ;;  %v270_v29 = vadd.f32 %v268_v28, %v501_v1 }
 0x1c3   :  { %272 = vst [vmem:[#allocation9 + $0x8] sm:$0xff] %v270_v29 }
 0x1c4   :  { %411 = shalt.err (!%p408_p6)
}
 0x1c5   :  { %s412_s11 = scalar_lea.hbm %s546_s6, 256 }
 0x1c6   :  { %p413_p7 = scmp.ne.s32.totalorder %s546_s6, %s412_s11  ;;  %p416_p8 = scmp.lt.u32.totalorder %s412_s11, %s546_s6 }
 0x1c8   :  { %p418_p9 = pnand %p416_p8, %p413_p7 }
 0x1ca   :  { %421 = shalt.err (!%p418_p9)
}
 0x1cb   :  { %284 = dma.vmem_to_hbm [thread:$0]  %s279_s30, 256, %s546_s6, [#allocation6], %s429_s7, %s429_s7, %s430_s8  }
 0x1cc   :  { %426 = dma.done.wait [#allocation6], 256  }
 0x1cd   :  { %427 = vsyncadd [#allocation6], 4294967040 }
 0x1ce   :  { %288 = vsyncpa [#allocation5], 1 }
 0x1cf   :  { %289 = vsyncpa [#allocation8], 1 }
 0x1d0   :  { %290 = vsyncpa [#allocation6], 1 }

</bundles_post_ra>
